<compile_context>
chip_gen: v7x
topology: tpu7x:2x2x1
jax: 0.10.0
libtpu: 0.0.40
codegen_flags: <defaults>
</compile_context>

<pallas_src>
import jax
import jax.numpy as jnp
from jax.experimental import pallas as pl
from jax.experimental.pallas import tpu as pltpu


def _intermediate_kernel(x_ref, w_ref, b_ref, o_ref, acc_ref):
    # x_ref: (tm, tk)  w_ref: (tk, tn)  b_ref: (1, tn)  o_ref: (tm, tn)
    # acc_ref: (tm, tn) f32 accumulator, persists across the K grid axis.
    k = pl.program_id(2)

    @pl.when(k == 0)
    def _():
        acc_ref[...] = jnp.zeros_like(acc_ref)

    # Plain MXU-native dot: weight already stored as (H, I).
    acc_ref[...] += jnp.dot(
        x_ref[...], w_ref[...], preferred_element_type=jnp.float32)

    @pl.when(k == pl.num_programs(2) - 1)
    def _():
        y = acc_ref[...] + b_ref[...].astype(jnp.float32)
        o_ref[...] = jnp.maximum(y, 0.0).astype(o_ref.dtype)


def prepare_weight(weight, compute_dtype=jnp.bfloat16):
    """One-time (model-load) transform of the torch nn.Linear weight.

    weight: (I, H) torch layout  ->  (H, I), cast to compute_dtype.
    Doing the transpose + cast once here (instead of per call) avoids a full
    weight-sized HBM read+write pass on every forward and removes any
    in-kernel transpose work.
    """
    w_t = jnp.asarray(weight).T  # (H, I)
    if compute_dtype is not None:
        w_t = w_t.astype(compute_dtype)
    return w_t


def _pick_tk(H, tk_max=512):
    """Largest legal K tile: full H if small, else a 128-multiple divisor of H.
    Falls back to zero-padding only if H has no usable divisor."""
    if H <= tk_max:
        return H, 0
    for cand in range(tk_max, 127, -128):   # 512, 384, 256, 128
        if H % cand == 0:
            return cand, 0
    # Last resort: pad K up to a multiple of tk_max (extra HBM pass over x/W).
    return tk_max, (-H) % tk_max


def intermediate_layer(hidden_states, weight_t, bias, *,
                       compute_dtype=jnp.bfloat16,
                       tm=512, tn=1024, tk_max=512,
                       vmem_limit_bytes=48 * 1024 * 1024):
    """ReLU(hidden_states @ W^T + b) with W supplied pre-transposed as (H, I).

    hidden_states: [B, S, H]; weight_t: [H, I] (use prepare_weight); bias: [I].
    compute_dtype: dtype fed to the MXU (default bf16); accumulation stays f32.
    """
    B, S, H = hidden_states.shape
    Hw, I = weight_t.shape
    assert Hw == H, "weight_t must be (hidden, intermediate); use prepare_weight()"
    M = B * S
    out_dtype = hidden_states.dtype

    x2d = hidden_states.reshape(M, H)
    w2d = weight_t
    if compute_dtype is not None:
        if x2d.dtype != compute_dtype:
            x2d = x2d.astype(compute_dtype)
        if w2d.dtype != compute_dtype:
            # Fallback only — weight should already be cast in prepare_weight.
            w2d = w2d.astype(compute_dtype)
    b2d = jnp.asarray(bias).reshape(1, I)

    # --- K tile: divisor of H (no pad) whenever possible -------------------
    tk, k_pad = _pick_tk(H, tk_max)
    if k_pad:
        x2d = jnp.pad(x2d, ((0, 0), (0, k_pad)))
        w2d = jnp.pad(w2d, ((0, k_pad), (0, 0)))
    Kp = H + k_pad

    # --- M/N tiles ----------------------------------------------------------
    if M <= 512:
        # Decode / small-batch regime: weight-bandwidth bound. Take all rows
        # in one tile and widen N so the full weight streams from HBM exactly
        # once per call with few grid steps.
        tm_eff = M
        tn_eff = min(I, 2048)
    else:
        tm_eff = min(tm, M)
        tn_eff = min(tn, I)

    grid_m = pl.cdiv(M, tm_eff)
    grid_n = pl.cdiv(I, tn_eff)
    grid_k = Kp // tk
    grid = (grid_m, grid_n, grid_k)

    # Actual HBM traffic: x is re-read per N tile, W per M tile.
    in_isz = jnp.dtype(x2d.dtype).itemsize
    out_isz = jnp.dtype(out_dtype).itemsize
    cost = pl.CostEstimate(
        flops=2 * M * H * I,
        transcendentals=0,
        bytes_accessed=(M * Kp * in_isz * grid_n
                        + Kp * I * in_isz * grid_m
                        + I * jnp.dtype(b2d.dtype).itemsize * grid_m
                        + M * I * out_isz),
    )

    out = pl.pallas_call(
        _intermediate_kernel,
        out_shape=jax.ShapeDtypeStruct((M, I), out_dtype),
        grid_spec=pltpu.PrefetchScalarGridSpec(
            num_scalar_prefetch=0,
            grid=grid,
            in_specs=[
                pl.BlockSpec((tm_eff, tk), lambda i, j, k: (i, k)),   # x tile
                pl.BlockSpec((tk, tn_eff), lambda i, j, k: (k, j)),   # W (H,I) tile
                pl.BlockSpec((1, tn_eff), lambda i, j, k: (0, j)),    # bias tile
            ],
            out_specs=pl.BlockSpec((tm_eff, tn_eff), lambda i, j, k: (i, j)),
            scratch_shapes=[pltpu.VMEM((tm_eff, tn_eff), jnp.float32)],
        ),
        compiler_params=pltpu.CompilerParams(
            # K (reduction) last and 'arbitrary'; M/N parallel so megacore /
            # v7x dual-TC sharding can split the independent output tiles.
            dimension_semantics=("parallel", "parallel", "arbitrary"),
            # Above the 16/32 MiB scoped defaults, below v7x's 64 MiB per-TC
            # physical VMEM; the default tiles use ~9 MiB.
            vmem_limit_bytes=vmem_limit_bytes,
        ),
        cost_estimate=cost,
    )(x2d, w2d, b2d)

    return out.reshape(B, S, I)


if __name__ == "__main__":
    # Small shapes consistent with the module's forward.
    batch, seq, hidden_size, intermediate_size = 2, 8, 32, 64

    key = jax.random.PRNGKey(0)
    k_x, k_w, k_b = jax.random.split(key, 3)

    hidden_states = jax.random.normal(
        k_x, (batch, seq, hidden_size), dtype=jnp.float32)
    # nn.Linear(hidden_size, intermediate_size): weight (I, H), bias (I)
    weight = jax.random.normal(
        k_w, (intermediate_size, hidden_size), dtype=jnp.float32) * 0.05
    bias = jax.random.normal(
        k_b, (intermediate_size,), dtype=jnp.float32) * 0.05

    # Reference (same math as torch: ReLU(x @ W^T + b)).
    ref = jnp.maximum(hidden_states @ weight.T + bias, 0.0)

    # 1) Exact f32 path (tight tolerance).
    w_t_f32 = prepare_weight(weight, compute_dtype=None)
    out_f32 = jax.block_until_ready(
        intermediate_layer(hidden_states, w_t_f32, bias, compute_dtype=None))
    assert out_f32.shape == (batch, seq, intermediate_size)
    assert jnp.allclose(out_f32, ref, atol=1e-5, rtol=1e-5)

    # 2) Default fast path: bf16 operands, f32 accumulation (relaxed tolerance).
    w_t_bf16 = prepare_weight(weight)   # one-time transpose + cast (model load)
    out_bf16 = jax.block_until_ready(
        intermediate_layer(hidden_states, w_t_bf16, bias))
    assert out_bf16.shape == (batch, seq, intermediate_size)
    assert jnp.allclose(out_bf16, ref, atol=3e-2, rtol=3e-2)

    print("KERNEL_OK")
</pallas_src>

<mosaic_0001>
module attributes {stable_mosaic.version = 11 : i64} {
  func.func @_intermediate_kernel(%arg0: i32, %arg1: i32, %arg2: i32, %arg3: memref<16x32xf32, #tpu.memory_space<vmem>>, %arg4: memref<32x64xf32, #tpu.memory_space<vmem>>, %arg5: memref<1x64xf32, #tpu.memory_space<vmem>>, %arg6: memref<16x64xf32, #tpu.memory_space<vmem>>, %arg7: memref<16x64xf32, #tpu.memory_space<vmem>>) attributes {dimension_semantics = [#tpu.dimension_semantics<parallel>, #tpu.dimension_semantics<parallel>, #tpu.dimension_semantics<arbitrary>], iteration_bounds = array<i64: 1, 1, 1>, scalar_prefetch = 0 : i64, scratch_operands = 1 : i64, tpu.core_type = #tpu.core_type<tc>, window_params = [{transform_indices = @transform_0, window_bounds = array<i64: 16, 32>}, {transform_indices = @transform_1, window_bounds = array<i64: 32, 64>}, {transform_indices = @transform_2, window_bounds = array<i64: 1, 64>}, {transform_indices = @transform_3, window_bounds = array<i64: 16, 64>}]} {
    %c0_i32 = arith.constant 0 : i32
    %0 = arith.cmpi eq, %arg2, %c0_i32 : i32
    %1 = arith.extui %0 : i1 to i32
    %c0_i32_0 = arith.constant 0 : i32
    %2 = arith.cmpi ne, %1, %c0_i32_0 : i32
    scf.if %2 {
      %cst_10 = arith.constant 0.000000e+00 : f32
      %12 = vector.broadcast %cst_10 : f32 to vector<16x64xf32>
      %c0_11 = arith.constant 0 : index
      %c0_12 = arith.constant 0 : index
      %13 = vector.load %arg7[%c0_11, %c0_12] : memref<16x64xf32, #tpu.memory_space<vmem>>, vector<16x64xf32>
      tpu.vector_store %arg7[%c0_11, %c0_12], %12 {strides = array<i32>} : memref<16x64xf32, #tpu.memory_space<vmem>>, vector<16x64xf32>,
    } else {
    }
    %c0 = arith.constant 0 : index
    %c0_1 = arith.constant 0 : index
    %3 = vector.load %arg7[%c0, %c0_1] : memref<16x64xf32, #tpu.memory_space<vmem>>, vector<16x64xf32>
    %c0_2 = arith.constant 0 : index
    %c0_3 = arith.constant 0 : index
    %4 = vector.load %arg3[%c0_2, %c0_3] : memref<16x32xf32, #tpu.memory_space<vmem>>, vector<16x32xf32>
    %c0_4 = arith.constant 0 : index
    %c0_5 = arith.constant 0 : index
    %5 = vector.load %arg4[%c0_4, %c0_5] : memref<32x64xf32, #tpu.memory_space<vmem>>, vector<32x64xf32>
    %cst = arith.constant dense<0.000000e+00> : vector<16x64xf32>
    %6 = tpu.matmul %4, %5, %cst {dimension_numbers = #tpu.dot_dimension_numbers<[1], [0], [0], [1], [0, 0, 1, 1], [], []>} : vector<16x32xf32>, vector<32x64xf32>, vector<16x64xf32> -> vector<16x64xf32>
    %7 = arith.addf %3, %6 : vector<16x64xf32>
    %c0_6 = arith.constant 0 : index
    %c0_7 = arith.constant 0 : index
    %8 = vector.load %arg7[%c0_6, %c0_7] : memref<16x64xf32, #tpu.memory_space<vmem>>, vector<16x64xf32>
    tpu.vector_store %arg7[%c0_6, %c0_7], %7 {strides = array<i32>} : memref<16x64xf32, #tpu.memory_space<vmem>>, vector<16x64xf32>,
    %c0_i32_8 = arith.constant 0 : i32
    %9 = arith.cmpi eq, %arg2, %c0_i32_8 : i32
    %10 = arith.extui %9 : i1 to i32
    %c0_i32_9 = arith.constant 0 : i32
    %11 = arith.cmpi ne, %10, %c0_i32_9 : i32
    scf.if %11 {
      %c0_10 = arith.constant 0 : index
      %c0_11 = arith.constant 0 : index
      %12 = vector.load %arg7[%c0_10, %c0_11] : memref<16x64xf32, #tpu.memory_space<vmem>>, vector<16x64xf32>
      %c0_12 = arith.constant 0 : index
      %c0_13 = arith.constant 0 : index
      %13 = vector.load %arg5[%c0_12, %c0_13] : memref<1x64xf32, #tpu.memory_space<vmem>>, vector<1x64xf32>
      %14 = vector.broadcast %13 : vector<1x64xf32> to vector<16x64xf32>
      %15 = arith.addf %12, %14 : vector<16x64xf32>
      %cst_14 = arith.constant 0.000000e+00 : f32
      %16 = vector.broadcast %cst_14 : f32 to vector<16x64xf32>
      %17 = arith.maximumf %15, %16 : vector<16x64xf32>
      %c0_15 = arith.constant 0 : index
      %c0_16 = arith.constant 0 : index
      %18 = vector.load %arg6[%c0_15, %c0_16] : memref<16x64xf32, #tpu.memory_space<vmem>>, vector<16x64xf32>
      tpu.vector_store %arg6[%c0_15, %c0_16], %17 {strides = array<i32>} : memref<16x64xf32, #tpu.memory_space<vmem>>, vector<16x64xf32>,
    } else {
    }
    return
  }
  func.func @transform_0(%arg0: i32, %arg1: i32, %arg2: i32) -> (i32, i32) {
    %c0_i32 = arith.constant 0 : i32
    return %arg0, %arg2 : i32, i32
  }
  func.func @transform_1(%arg0: i32, %arg1: i32, %arg2: i32) -> (i32, i32) {
    %c0_i32 = arith.constant 0 : i32
    return %arg2, %arg1 : i32, i32
  }
  func.func @transform_2(%arg0: i32, %arg1: i32, %arg2: i32) -> (i32, i32) {
    %c0_i32 = arith.constant 0 : i32
    %c0_i32_0 = arith.constant 0 : i32
    return %c0_i32, %arg1 : i32, i32
  }
  func.func @transform_3(%arg0: i32, %arg1: i32, %arg2: i32) -> (i32, i32) {
    %c0_i32 = arith.constant 0 : i32
    return %arg0, %arg1 : i32, i32
  }
}

</mosaic_0001>

<bundles_post_ra>
// kernel: tpu_custom_call.1
= control target key start
LH: loop header
LB: loop body
LE: loop exit
PB: predicated region body
PF: predicated region fallthrough
CT: control target
= control target key end

     0   :  { %8 = vsyncpa [#allocation4], 0  ;;  %s367_s0 = inlined_call_operand.hbm [shape: f32[16,32], index: 0, kind: input, shape index: {}]   ;;  %s368_s1 = inlined_call_operand.hbm [shape: f32[32,64], index: 1, kind: input, shape index: {}]   ;;  %s369_s2 = inlined_call_operand.vmem [shape: f32[1,64], index: 2, kind: input, shape index: {}]   ;;  %s370_s3 = inlined_call_operand.hbm [shape: f32[16,64], index: 3, kind: output, shape index: {}]  }
   0x1   :  { %9 = vsyncpa [#allocation7], 0 }
   0x2   :  { %10 = vsyncpa [#allocation5], 0  ;;  %s287_s12 = smov [#allocation3]   ;;  %s215_s16 = scalar_lea.hbm %s367_s0, 256 }
   0x3   :  { %s16_s13 = sshll.u32 %s287_s12, 4  ;;  %p216_p0 = scmp.ne.s32.totalorder %s367_s0, %s215_s16  ;;  %s17_s13 = int_to_ptr.vmem [resolvable:$true] %s16_s13 }
   0x4   :  { %p219_p1 = scmp.lt.u32.totalorder %s215_s16, %s367_s0 }
   0x6   :  { %p221_p2 = pnand %p219_p1, %p216_p0 }
   0x8   :  { %224 = shalt.err (!%p221_p2)
}
   0x9   :  { %s225_s21 = scalar_lea.vmem %s17_s13, 256  ;;  %p230_p4 = scmp.lt.s32.totalorder %s17_s13, %s17_s13 }
   0xa   :  { %p226_p3 = scmp.ne.s32.totalorder %s17_s13, %s225_s21  ;;  %p231_p5 = scmp.lt.s32.totalorder %s225_s21, %s225_s21 }
   0xc   :  { %p232_p6 = por %p231_p5, %p230_p4 }
   0xe   :  { %p233_p7 = pnand %p232_p6, %p226_p3 }
  0x10   :  { %236 = shalt.err (!%p233_p7)
}
  0x11   :  { %s288_s22 = smov 128   ;;  %s289_s23 = smov 8  }
  0x12   :  { %22 = dma.hbm_to_vmem [thread:$0]  %s367_s0, 256, %s17_s13, [#allocation4], %s288_s22, %s288_s22, %s289_s23  }
  0x13   :  { %s290_s26 = smov [#allocation6]   ;;  %s237_s30 = scalar_lea.hbm %s368_s1, 512 }
  0x14   :  { %s28_s27 = sshll.u32 %s290_s26, 4  ;;  %p238_p8 = scmp.ne.s32.totalorder %s368_s1, %s237_s30  ;;  %s29_s27 = int_to_ptr.vmem [resolvable:$true] %s28_s27 }
  0x15   :  { %p241_p9 = scmp.lt.u32.totalorder %s237_s30, %s368_s1 }
  0x17   :  { %p243_p10 = pnand %p241_p9, %p238_p8 }
  0x19   :  { %246 = shalt.err (!%p243_p10)
}
  0x1a   :  { %s247_s8 = scalar_lea.vmem %s29_s27, 512  ;;  %p252_p12 = scmp.lt.s32.totalorder %s29_s27, %s29_s27 }
  0x1b   :  { %p248_p11 = scmp.ne.s32.totalorder %s29_s27, %s247_s8  ;;  %p253_p13 = scmp.lt.s32.totalorder %s247_s8, %s247_s8 }
  0x1d   :  { %p254_p0 = por %p253_p13, %p252_p12 }
  0x1f   :  { %p255_p1 = pnand %p254_p0, %p248_p11 }
  0x21   :  { %258 = shalt.err (!%p255_p1)
}
  0x22   :  { %34 = dma.hbm_to_vmem [thread:$0]  %s368_s1, 512, %s29_s27, [#allocation7], %s288_s22, %s288_s22, %s289_s23  }
  0x23   :  { %281 = dma.done.wait [#allocation4], 256  }
  0x24   :  { %282 = vsyncadd [#allocation4], 4294967040 }
  0x25   :  { %283 = dma.done.wait [#allocation7], 512  }
  0x26   :  { %284 = vsyncadd [#allocation7], 4294966784  ;;  %vm47_vm0 = vcmask 523264   ;;  %v291_v0 = vmov 0.0   ;;  %vm58_vm1 = vcmask 261120   ;;  %v54_v1 = vld [vmem:[#allocation6] sm:$0xff] }
  0x27   :  { %49 = vst.msk [vmem:[#allocation2 + $0x8] sm:$0xff] %vm47_vm0, %v291_v0  ;;  %48 = vst.msk [vmem:[#allocation2] sm:$0xff] %vm47_vm0, %v291_v0  ;;  %v55_v2 = vld [vmem:[#allocation6 + $0x8] sm:$0xff]  ;;  %v56_v3 = vld [vmem:[#allocation6 + $0x10] sm:$0xff]  ;;  %s292_s11 = smov [#allocation8]  }
  0x28   :  { %v201_v4 = vpack.c.bf16 %v55_v2, %v54_v1  ;;  %v57_v5 = vld [vmem:[#allocation6 + $0x18] sm:$0xff]  ;;  %v52_v6 = vld [vmem:[#allocation3] sm:$0xff]  ;;  %v183_v15 = vld [vmem:[%s369_s2] ss:$0 sm:$0xff]  ;;  %s168_s12 = sshll.u32 %s292_s11, 4  ;;  %s169_s12 = int_to_ptr.vmem [resolvable:$true] %s168_s12 }
  0x29   :  { %v205_v7 = vpack.c.bf16 %v57_v5, %v56_v3  ;;  %198 = vmatprep.mubr.msk.f32.mxu0 %vm58_vm1, %v52_v6  ;;  %v53_v8 = vld [vmem:[#allocation3 + $0x8] sm:$0xff]  ;;  %s259_s13 = scalar_lea.vmem %s169_s12, 256  ;;  %p264_p3 = scmp.lt.s32.totalorder %s169_s12, %s169_s12 }
  0x2a   :  { %202 = vmatprep.subr.bf16.mxu0 %v201_v4  ;;  %p260_p2 = scmp.ne.s32.totalorder %s169_s12, %s259_s13  ;;  %p265_p4 = scmp.lt.s32.totalorder %s259_s13, %s259_s13 }
  0x2b   :  { %204 = vmatpush3.bf16.msra.mxu0 %v201_v4 }
  0x2c   :  { %206 = vmatprep.subr.bf16.mxu0 %v205_v7  ;;  %p266_p5 = por %p265_p4, %p264_p3 }
  0x2e   :  { %v51_v9 = vld [vmem:[#allocation2 + $0x8] sm:$0xff]  ;;  %v50_v10 = vld [vmem:[#allocation2] sm:$0xff]  ;;  %p267_p6 = pnand %p266_p5, %p260_p2 }
  0x2f   :  { %208 = vmatpush3.bf16.msra.mxu0 %v205_v7 }
  0x32   :  { %199 = vmatmul.mubr.msk.f32.vlgmr.msra.gmra.mrb[0].mxu0 %vm58_vm1, %v53_v8 }
 0x105   :  { %v200_v11 = vpop.f32.mrb[0].mxu0 }
 0x106   :  { %v141_v12 = vadd.f32 %v200_v11, %v51_v9  ;;  %v131_v13 = vpop.f32.mrb[1].mxu0 }
 0x107   :  { %v140_v14 = vadd.f32 %v131_v13, %v50_v10 }
 0x108   :  { %144 = vst.msk [vmem:[#allocation2 + $0x8] sm:$0xff] %vm47_vm0, %v141_v12 }
 0x109   :  { %143 = vst.msk [vmem:[#allocation2] sm:$0xff] %vm47_vm0, %v140_v14 }
 0x10f   :  { %v149_v16 = vld [vmem:[#allocation2 + $0x8] sm:$0xff] }
 0x110   :  { %v148_v17 = vld [vmem:[#allocation2] sm:$0xff]  ;;  %v158_v18 = vadd.f32 %v183_v15, %v149_v16 }
 0x111   :  { %v157_v19 = vadd.f32 %v183_v15, %v148_v17 }
 0x112   :  { %v160_v20 = vmax.f32 %v158_v18, 0.0 }
 0x113   :  { %v159_v21 = vmax.f32 %v157_v19, 0.0 }
 0x114   :  { %162 = vst.msk [vmem:[#allocation8 + $0x8] sm:$0xff] %vm47_vm0, %v160_v20 }
 0x115   :  { %161 = vst.msk [vmem:[#allocation8] sm:$0xff] %vm47_vm0, %v159_v21 }
 0x116   :  { %270 = shalt.err (!%p267_p6)
}
 0x117   :  { %s271_s15 = scalar_lea.hbm %s370_s3, 256 }
 0x118   :  { %p272_p7 = scmp.ne.s32.totalorder %s370_s3, %s271_s15  ;;  %p275_p8 = scmp.lt.u32.totalorder %s271_s15, %s370_s3 }
 0x11a   :  { %p277_p9 = pnand %p275_p8, %p272_p7 }
 0x11c   :  { %280 = shalt.err (!%p277_p9)
}
 0x11d   :  { %174 = dma.vmem_to_hbm [thread:$0]  %s169_s12, 256, %s370_s3, [#allocation5], %s288_s22, %s288_s22, %s289_s23  }
 0x11e   :  { %285 = dma.done.wait [#allocation5], 256  }
 0x11f   :  { %286 = vsyncadd [#allocation5], 4294967040 }
 0x120   :  { %178 = vsyncpa [#allocation4], 1 }
 0x121   :  { %179 = vsyncpa [#allocation7], 1 }
 0x122   :  { %180 = vsyncpa [#allocation5], 1 }

</bundles_post_ra>
